<compile_context>
chip_gen: v5e
topology: v5e:2x2
jax: 0.10.0
libtpu: 0.0.40
codegen_flags: <defaults>
</compile_context>

<pallas_src>
import jax
import jax.numpy as jnp
from jax.experimental import pallas as pl
from jax.experimental.pallas import tpu as pltpu


def _copy_kernel(x_ref, o_ref):
    # The flatten itself is a layout/indexing operation; the kernel's job is
    # the pipelined, lane-dense data movement of one tile.
    o_ref[...] = x_ref[...]


def _round_up(x, m):
    return (x + m - 1) // m * m


def _vmem_capacity_bytes():
    try:
        return int(pltpu.get_tpu_info().vmem_capacity_bytes)
    except Exception:
        return None


_PREFERRED_WIDTHS = (8192, 4096, 2048, 1024, 512, 256, 128)


def _pick_slab(rows, cols):
    """Lane-dense (R', C') factorization of rows*cols with C' a multiple of
    128, preferring 512-8192 lanes. Falls back to (rows, cols)."""
    n = rows * cols
    if n % 128 == 0:
        for w in _PREFERRED_WIDTHS:
            if n % w == 0:
                return n // w, w
    return rows, cols


def flatten_pallas(x, dims):
    """Pallas implementation of Flatten(dims).forward(x)."""
    dim = 1
    for d in dims:
        dim *= x.shape[d]

    # Row-major collapse (metadata only) — matches torch.Tensor.reshape(-1, dim).
    x2 = jnp.reshape(x, (-1, dim))
    rows, cols = x2.shape
    if rows == 0 or cols == 0:
        return x2  # nothing to copy

    # --- Lane-dense slab shaping -------------------------------------------
    srows, scols = _pick_slab(rows, cols)
    slab = x2 if (srows, scols) == (rows, cols) else jnp.reshape(x2, (srows, scols))

    dtype_bytes = jnp.dtype(x.dtype).itemsize
    sub = max(8, 32 // max(dtype_bytes, 1))  # sublane multiple for this dtype

    # --- Generation-gated tile / VMEM budgets --------------------------------
    vmem_cap = _vmem_capacity_bytes()
    if vmem_cap is not None and vmem_cap >= (96 << 20):   # v5e / v6e: 128 MiB VMEM
        target_tile = 8 << 20
        vmem_ceiling = 64 << 20
    else:                                                  # v7x (64 MiB) or unknown
        target_tile = 4 << 20
        vmem_ceiling = 32 << 20

    # --- Padded-footprint-aware sizing ---------------------------------------
    padded_cols = _round_up(scols, 128)
    padded_rows = _round_up(srows, sub)
    padded_row_bytes = padded_cols * dtype_bytes
    padded_total = padded_rows * padded_row_bytes

    if padded_total <= target_tile:
        # Whole array in one block: no per-step overhead, nothing to pipeline.
        tile_r, tile_c = srows, scols
        grid = (1,)
    elif padded_row_bytes <= target_tile:
        # Row (sublane) tiling with full lane width: contiguous HBM DMAs and
        # lane-dense stores.
        tile_c = scols
        tile_r = max(sub, (target_tile // padded_row_bytes) // sub * sub)
        if tile_r >= srows:
            tile_r = srows
        grid = (pl.cdiv(srows, tile_r),)
    else:
        # A single (padded) row exceeds the tile budget — only reachable on the
        # non-lane-dense fallback slab. Add a lane-dense column grid axis.
        tile_r = srows if srows <= sub else sub
        tile_c = max(128, (target_tile // (sub * dtype_bytes)) // 128 * 128)
        if tile_c >= scols:
            tile_c = scols
        grid = (pl.cdiv(srows, tile_r), pl.cdiv(scols, tile_c))

    # VMEM limit from the padded, double-buffered footprint of in + out tiles.
    padded_tile_bytes = (_round_up(tile_r, sub) * _round_up(tile_c, 128)
                         * dtype_bytes)
    vmem_limit = int(min(max(4 * padded_tile_bytes + (2 << 20), 8 << 20),
                         vmem_ceiling))

    if len(grid) == 1:
        in_spec = pl.BlockSpec((tile_r, tile_c), lambda i: (i, 0))
        out_spec = pl.BlockSpec((tile_r, tile_c), lambda i: (i, 0))
        dim_sem = ("parallel",)
    else:
        in_spec = pl.BlockSpec((tile_r, tile_c), lambda i, j: (i, j))
        out_spec = pl.BlockSpec((tile_r, tile_c), lambda i, j: (i, j))
        dim_sem = ("parallel", "parallel")

    copied = pl.pallas_call(
        _copy_kernel,
        out_shape=jax.ShapeDtypeStruct((srows, scols), x.dtype),
        grid_spec=pltpu.PrefetchScalarGridSpec(
            num_scalar_prefetch=0,
            grid=grid,
            in_specs=[in_spec],
            out_specs=out_spec,
        ),
        # Identity copy: alias the input slab to the output so XLA can donate
        # the buffer and skip the extra HBM output allocation when possible.
        input_output_aliases={0: 0},
        compiler_params=pltpu.CompilerParams(
            dimension_semantics=dim_sem,
            vmem_limit_bytes=vmem_limit,
        ),
    )(slab)

    if (srows, scols) == (rows, cols):
        return copied
    return jnp.reshape(copied, (rows, cols))


if __name__ == "__main__":
    key = jax.random.PRNGKey(0)

    # Primary demo: small NCHW feature map (N, C, H, W), flatten C,H,W.
    x = jax.random.normal(key, (2, 4, 16, 16), dtype=jnp.float32)
    out = flatten_pallas(x, (1, 2, 3))
    out = jax.block_until_ready(out)
    ref = jnp.reshape(x, (-1, 4 * 16 * 16))
    assert out.shape == (2, 1024), out.shape
    assert out.dtype == x.dtype
    assert bool(jnp.array_equal(out, ref))

    # Multi-step row-tiled, lane-dense-refactored path (~8 MiB f32).
    key2 = jax.random.PRNGKey(1)
    x_big = jax.random.normal(key2, (512, 4, 32, 32), dtype=jnp.float32)
    out_big = jax.block_until_ready(flatten_pallas(x_big, (1, 2, 3)))
    assert out_big.shape == (512, 4096), out_big.shape
    assert bool(jnp.array_equal(out_big, jnp.reshape(x_big, (-1, 4 * 32 * 32))))

    # Fallback path: element count not a multiple of 128 (padded single block).
    key3 = jax.random.PRNGKey(2)
    x_odd = jax.random.normal(key3, (7, 3, 3), dtype=jnp.float32)
    out_odd = jax.block_until_ready(flatten_pallas(x_odd, (1, 2)))
    assert out_odd.shape == (7, 9), out_odd.shape
    assert bool(jnp.array_equal(out_odd, jnp.reshape(x_odd, (-1, 9))))

    # Narrow-dim bf16 case: lane-dense re-factorization avoids masked stores.
    key4 = jax.random.PRNGKey(3)
    x_bf = jax.random.normal(key4, (2, 3, 8, 8), dtype=jnp.bfloat16)
    out_bf = jax.block_until_ready(flatten_pallas(x_bf, (1, 2, 3)))
    assert out_bf.shape == (2, 192), out_bf.shape
    assert out_bf.dtype == jnp.bfloat16
    assert bool(jnp.array_equal(out_bf, jnp.reshape(x_bf, (-1, 192))))

    print("KERNEL_OK")
</pallas_src>

<mosaic_0001>
module attributes {stable_mosaic.version = 11 : i64} {
  func.func @_copy_kernel(%arg0: i32, %arg1: memref<1x2048xf32, #tpu.memory_space<vmem>>, %arg2: memref<1x2048xf32, #tpu.memory_space<vmem>>) attributes {dimension_semantics = [#tpu.dimension_semantics<parallel>], iteration_bounds = array<i64: 1>, scalar_prefetch = 0 : i64, scratch_operands = 0 : i64, tpu.core_type = #tpu.core_type<tc>, window_params = [{transform_indices = @transform_0, window_bounds = array<i64: 1, 2048>}, {transform_indices = @transform_1, window_bounds = array<i64: 1, 2048>}]} {
    %c0 = arith.constant 0 : index
    %c0_0 = arith.constant 0 : index
    %0 = vector.load %arg1[%c0, %c0_0] : memref<1x2048xf32, #tpu.memory_space<vmem>>, vector<1x2048xf32>
    %c0_1 = arith.constant 0 : index
    %c0_2 = arith.constant 0 : index
    %1 = vector.load %arg2[%c0_1, %c0_2] : memref<1x2048xf32, #tpu.memory_space<vmem>>, vector<1x2048xf32>
    tpu.vector_store %arg2[%c0_1, %c0_2], %0 {strides = array<i32>} : memref<1x2048xf32, #tpu.memory_space<vmem>>, vector<1x2048xf32>,
    return
  }
  func.func @transform_0(%arg0: i32) -> (i32, i32) {
    %c0_i32 = arith.constant 0 : i32
    %c0_i32_0 = arith.constant 0 : i32
    return %arg0, %c0_i32 : i32, i32
  }
  func.func @transform_1(%arg0: i32) -> (i32, i32) {
    %c0_i32 = arith.constant 0 : i32
    %c0_i32_0 = arith.constant 0 : i32
    return %arg0, %c0_i32 : i32, i32
  }
}

</mosaic_0001>

<bundles_post_ra>
// kernel: tpu_custom_call.1
= control target key start
LH: loop header
LB: loop body
LE: loop exit
PB: predicated region body
PF: predicated region fallthrough
CT: control target
= control target key end

     0   :  { %6 = vsyncpa [#allocation3], 0  ;;  %s116_s0 = inlined_call_operand.hbm [shape: f32[1,2048], index: 0, kind: input, shape index: {}, may-alias: {0,1}]   ;;  %s117_s1 = inlined_call_operand.hbm [shape: f32[1,2048], index: 1, kind: output, shape index: {}, may-alias: {0,1}]  }
   0x1   :  { %7 = vsyncpa [#allocation4], 0  ;;  %s13_s8 = sshll.u32 %s116_s0, 4  ;;  %s98_s9 = smov [#allocation2]   ;;  %s14_s8 = int_to_ptr.hbm [resolvable:$true] %s13_s8 }
   0x2   :  { %s15_s10 = sshll.u32 %s98_s9, 4  ;;  %s16_s10 = int_to_ptr.vmem [resolvable:$true] %s15_s10 }
   0x3   :  { %18 = dma.hbm_to_vmem [thread:$0]  %s14_s8, 256, %s16_s10, [#allocation3]  }
   0x4   :  { %94 = dma.done.wait [#allocation3], 256  }
   0x5   :  { %95 = vsyncadd [#allocation3], 4294967040  ;;  %s99_s11 = smov [#allocation5]   ;;  %s34_s15 = sshll.u32 %s117_s1, 4  ;;  %v23_v0 = vld [vmem:[#allocation2] sm:$0xff]  ;;  %v24_v1 = vld [vmem:[#allocation2 + $0x8] sm:$0xff]  ;;  %s35_s15 = int_to_ptr.hbm [resolvable:$true] %s34_s15 }
   0x6   :  { %s32_s12 = sshll.u32 %s99_s11, 4  ;;  %25 = vst [vmem:[#allocation5] sm:$0xff] %v23_v0  ;;  %s33_s12 = int_to_ptr.vmem [resolvable:$true] %s32_s12 }
   0x7   :  { %26 = vst [vmem:[#allocation5 + $0x8] sm:$0xff] %v24_v1 }
   0x8   :  { %37 = dma.vmem_to_hbm [thread:$0]  %s33_s12, 256, %s35_s15, [#allocation4]  }
   0x9   :  { %96 = dma.done.wait [#allocation4], 256  }
   0xa   :  { %97 = vsyncadd [#allocation4], 4294967040 }
   0xb   :  { %42 = vsyncpa [#allocation3], 1 }
   0xc   :  { %43 = vsyncpa [#allocation4], 1 }

</bundles_post_ra>
